<compile_context>
chip_gen: v7x
topology: tpu7x:2x2x1
jax: 0.10.0
libtpu: 0.0.40
codegen_flags: <defaults>
</compile_context>

<pallas_src>
import jax
import jax.numpy as jnp
import numpy as np
from jax import lax
from jax.experimental import pallas as pl
from jax.experimental.pallas import tpu as pltpu

BN_EPS = 1e-5
_VMEM_LIMIT = 32 * 1024 * 1024  # non-binding for this tiled design; safe on v5e/v6e/v7x


def _block_diag(w, p):
    """(a, b) -> (p*a, p*b) block-diagonal with p copies of w on the diagonal."""
    if p == 1:
        return w
    a, b = w.shape
    eye = jnp.eye(p, dtype=w.dtype)
    return (eye[:, None, :, None] * w[None, :, None, :]).reshape(p * a, p * b)


def _stats_kernel(x_ref, w1_ref, sum_ref, sumsq_ref):
    """Pass 1: per-core partial sum / sumsq of h = x @ W1' over this core's batch tiles."""
    i = pl.program_id(1)  # reduction axis within this core's shard

    @pl.when(i == 0)
    def _init():
        sum_ref[...] = jnp.zeros_like(sum_ref)
        sumsq_ref[...] = jnp.zeros_like(sumsq_ref)

    # f32 x tile cast to bf16 in-kernel (VPU cast hides under MXU/DMA; avoids a separate
    # full-HBM bf16 materialization of x in the wrapper), f32 accumulation on the MXU.
    h = jnp.dot(x_ref[...].astype(jnp.bfloat16), w1_ref[...],
                preferred_element_type=jnp.float32)
    sum_ref[...] += jnp.sum(h, axis=0).reshape(sum_ref.shape)
    sumsq_ref[...] += jnp.sum(h * h, axis=0).reshape(sumsq_ref.shape)


def _apply_kernel(x_ref, w1_ref, scale_ref, shift_ref, w2_ref, o_ref):
    """Pass 2: h = x @ W1' ; relu(h*scale + shift) ; @ W2' -> one output tile per step."""
    h = jnp.dot(x_ref[...].astype(jnp.bfloat16), w1_ref[...],
                preferred_element_type=jnp.float32)
    h = jnp.maximum(h * scale_ref[...] + shift_ref[...], 0.0)  # fused BN + ReLU (f32 VPU)
    o_ref[...] = jnp.dot(h.astype(jnp.bfloat16), w2_ref[...],
                         preferred_element_type=jnp.float32).astype(o_ref.dtype)


def mlp_forward(x, w1, gamma, beta, w2, *, tile_rows=None):
    n, c_in = x.shape
    hidden = w1.shape[1]
    c_out = w2.shape[1]

    # --- Lane packing factor: fold P batch rows per 128-lane group (lane-dense operands).
    if c_in < 128 and 128 % c_in == 0 and n % (128 // c_in) == 0:
        P = 128 // c_in
    else:
        P = 1  # fallback: no packing (blocks still use full-extent feature dims)
    n_p = n // P
    c_in_p, hid_p, c_out_p = c_in * P, hidden * P, c_out * P

    x_p = x.reshape(n_p, c_in_p)                     # free row-major view; stays f32 in HBM
    w1_p = _block_diag(w1.astype(jnp.bfloat16), P)   # (c_in_p, hid_p)  bf16 MXU operand
    w2_p = _block_diag(w2.astype(jnp.bfloat16), P)   # (hid_p, c_out_p) bf16 MXU operand

    # --- Batch tiling over packed rows (up to 512 packed rows = 4096 batch rows per tile).
    if tile_rows is None:
        cands = [t for t in (512, 256, 128, 64, 32, 16, 8) if t <= n_p and n_p % t == 0]
        tile_rows = cands[0] if cands else n_p
    if n_p % tile_rows != 0:
        raise ValueError(f"packed batch {n_p} must be divisible by tile_rows {tile_rows}")
    if tile_rows != n_p and tile_rows % 8 != 0:
        raise ValueError("tile_rows must be a multiple of 8 (f32 sublane) or the full batch")
    num_tiles = n_p // tile_rows

    # --- Pass 1: full-batch BN statistics of h = x @ W1'.
    # Leading size-2 "parallel" axis splits the reduction across both TensorCores on v7x
    # (per-core partial sums); on single-TC v5e/v6e it is just a sequential loop.
    num_cores = 2 if num_tiles % 2 == 0 else 1
    tiles_per_core = num_tiles // num_cores

    part_sum, part_sumsq = pl.pallas_call(
        _stats_kernel,
        grid=(num_cores, tiles_per_core),
        in_specs=[
            pl.BlockSpec((tile_rows, c_in_p), lambda c, i: (c * tiles_per_core + i, 0)),
            pl.BlockSpec((c_in_p, hid_p), lambda c, i: (0, 0)),    # resident weight
        ],
        out_specs=[
            pl.BlockSpec((1, 1, hid_p), lambda c, i: (c, 0, 0)),   # per-core accumulator
            pl.BlockSpec((1, 1, hid_p), lambda c, i: (c, 0, 0)),
        ],
        out_shape=[jax.ShapeDtypeStruct((num_cores, 1, hid_p), jnp.float32),
                   jax.ShapeDtypeStruct((num_cores, 1, hid_p), jnp.float32)],
        compiler_params=pltpu.CompilerParams(
            dimension_semantics=("parallel", "arbitrary"),
            vmem_limit_bytes=_VMEM_LIMIT),
    )(x_p, w1_p)

    # --- Finalize fused BN scale/shift (tiny O(hidden) f32 math in the wrapper).
    sum_h = part_sum.sum(axis=(0, 1)).reshape(P, hidden).sum(axis=0)     # (hidden,)
    sum_h2 = part_sumsq.sum(axis=(0, 1)).reshape(P, hidden).sum(axis=0)
    inv_n = 1.0 / float(n)
    mean = sum_h * inv_n
    var = jnp.maximum(sum_h2 * inv_n - mean * mean, 0.0)   # clamp: catastrophic cancellation
    scale = gamma.astype(jnp.float32) * lax.rsqrt(var + BN_EPS)
    shift = beta.astype(jnp.float32) - mean * scale
    scale_p = jnp.tile(scale, P).reshape(1, hid_p)          # replicate per lane group
    shift_p = jnp.tile(shift, P).reshape(1, hid_p)

    # --- Pass 2: normalize + ReLU + second matmul; batch tiles independent -> "parallel".
    y_p = pl.pallas_call(
        _apply_kernel,
        grid=(num_tiles,),
        in_specs=[
            pl.BlockSpec((tile_rows, c_in_p), lambda i: (i, 0)),
            pl.BlockSpec((c_in_p, hid_p), lambda i: (0, 0)),       # resident weight
            pl.BlockSpec((1, hid_p), lambda i: (0, 0)),            # resident BN scale
            pl.BlockSpec((1, hid_p), lambda i: (0, 0)),            # resident BN shift
            pl.BlockSpec((hid_p, c_out_p), lambda i: (0, 0)),      # resident weight
        ],
        out_specs=pl.BlockSpec((tile_rows, c_out_p), lambda i: (i, 0)),
        out_shape=jax.ShapeDtypeStruct((n_p, c_out_p), x.dtype),
        compiler_params=pltpu.CompilerParams(
            dimension_semantics=("parallel",),
            vmem_limit_bytes=_VMEM_LIMIT),
    )(x_p, w1_p, scale_p, shift_p, w2_p)

    return y_p.reshape(n, c_out)  # free row-major view back to (batch, out_features)


def mlp_reference(x, w1, gamma, beta, w2):
    """Pure-JAX f32 reference matching PyTorch forward semantics (BN training mode)."""
    h = x.astype(jnp.float32) @ w1
    mean = jnp.mean(h, axis=0, keepdims=True)
    var = jnp.mean((h - mean) ** 2, axis=0, keepdims=True)
    h = (h - mean) / jnp.sqrt(var + BN_EPS) * gamma.reshape(1, -1) + beta.reshape(1, -1)
    h = jnp.maximum(h, 0.0)
    return (h @ w2).astype(x.dtype)


if __name__ == "__main__":
    # Small shapes consistent with the module: x is (batch, in_features).
    batch, in_features, hidden_features, out_features = 128, 16, 32, 16

    key = jax.random.PRNGKey(0)
    kx, kw1, kw2 = jax.random.split(key, 3)

    x = jax.random.normal(kx, (batch, in_features), dtype=jnp.float32)

    # nn.Linear-style uniform init; weights stored pre-transposed as (C_in, C_out).
    bound1 = 1.0 / np.sqrt(in_features)
    bound2 = 1.0 / np.sqrt(hidden_features)
    w1 = jax.random.uniform(kw1, (in_features, hidden_features),
                            minval=-bound1, maxval=bound1, dtype=jnp.float32)
    w2 = jax.random.uniform(kw2, (hidden_features, out_features),
                            minval=-bound2, maxval=bound2, dtype=jnp.float32)
    # BatchNorm1d affine params (PyTorch default: gamma=1, beta=0).
    gamma = jnp.ones((hidden_features,), dtype=jnp.float32)
    beta = jnp.zeros((hidden_features,), dtype=jnp.float32)

    # tile_rows=8 packed rows (= 64 batch rows/tile) -> 2 tiles, exercising the
    # multi-tile grid and the 2-way pass-1 reduction split.
    y = mlp_forward(x, w1, gamma, beta, w2, tile_rows=8)
    y = jax.block_until_ready(y)

    y_ref = mlp_reference(x, w1, gamma, beta, w2)
    # bf16 MXU operands with f32 accumulation -> loosened tolerance vs f32 reference.
    np.testing.assert_allclose(np.asarray(y), np.asarray(y_ref), rtol=5e-2, atol=5e-2)

    print("KERNEL_OK")
</pallas_src>

<mosaic_0001>
module attributes {stable_mosaic.version = 11 : i64} {
  func.func @_stats_kernel(%arg0: i32, %arg1: i32, %arg2: memref<8x128xf32, #tpu.memory_space<vmem>>, %arg3: memref<128x256xbf16, #tpu.memory_space<vmem>>, %arg4: memref<1x1x256xf32, #tpu.memory_space<vmem>>, %arg5: memref<1x1x256xf32, #tpu.memory_space<vmem>>) attributes {dimension_semantics = [#tpu.dimension_semantics<parallel>, #tpu.dimension_semantics<arbitrary>], iteration_bounds = array<i64: 2, 1>, scalar_prefetch = 0 : i64, scratch_operands = 0 : i64, tpu.core_type = #tpu.core_type<tc>, window_params = [{transform_indices = @transform_0, window_bounds = array<i64: 8, 128>}, {pipeline_mode = #tpu.pipeline_mode<synchronous>, transform_indices = @transform_1, window_bounds = array<i64: 128, 256>}, {transform_indices = @transform_2, window_bounds = array<i64: 1, 1, 256>}, {transform_indices = @transform_3, window_bounds = array<i64: 1, 1, 256>}]} {
    %c0_i32 = arith.constant 0 : i32
    %0 = arith.cmpi eq, %arg1, %c0_i32 : i32
    %1 = arith.extui %0 : i1 to i32
    %c0_i32_0 = arith.constant 0 : i32
    %2 = arith.cmpi ne, %1, %c0_i32_0 : i32
    scf.if %2 {
      %cst_18 = arith.constant 0.000000e+00 : f32
      %18 = vector.broadcast %cst_18 : f32 to vector<1x1x256xf32>
      %c0_19 = arith.constant 0 : index
      %c0_20 = arith.constant 0 : index
      %c0_21 = arith.constant 0 : index
      %19 = vector.load %arg4[%c0_19, %c0_20, %c0_21] : memref<1x1x256xf32, #tpu.memory_space<vmem>>, vector<1x1x256xf32>
      tpu.vector_store %arg4[%c0_19, %c0_20, %c0_21], %18 {strides = array<i32>} : memref<1x1x256xf32, #tpu.memory_space<vmem>>, vector<1x1x256xf32>,
      %cst_22 = arith.constant 0.000000e+00 : f32
      %20 = vector.broadcast %cst_22 : f32 to vector<1x1x256xf32>
      %c0_23 = arith.constant 0 : index
      %c0_24 = arith.constant 0 : index
      %c0_25 = arith.constant 0 : index
      %21 = vector.load %arg5[%c0_23, %c0_24, %c0_25] : memref<1x1x256xf32, #tpu.memory_space<vmem>>, vector<1x1x256xf32>
      tpu.vector_store %arg5[%c0_23, %c0_24, %c0_25], %20 {strides = array<i32>} : memref<1x1x256xf32, #tpu.memory_space<vmem>>, vector<1x1x256xf32>,
    } else {
    }
    %c0 = arith.constant 0 : index
    %c0_1 = arith.constant 0 : index
    %3 = vector.load %arg2[%c0, %c0_1] : memref<8x128xf32, #tpu.memory_space<vmem>>, vector<8x128xf32>
    %4 = arith.truncf %3 : vector<8x128xf32> to vector<8x128xbf16>
    %c0_2 = arith.constant 0 : index
    %c0_3 = arith.constant 0 : index
    %5 = vector.load %arg3[%c0_2, %c0_3] : memref<128x256xbf16, #tpu.memory_space<vmem>>, vector<128x256xbf16>
    %cst = arith.constant dense<0.000000e+00> : vector<8x256xf32>
    %6 = tpu.matmul %4, %5, %cst {dimension_numbers = #tpu.dot_dimension_numbers<[1], [0], [0], [1], [0, 0, 1, 1], [], []>} : vector<8x128xbf16>, vector<128x256xbf16>, vector<8x256xf32> -> vector<8x256xf32>
    %c0_4 = arith.constant 0 : index
    %c0_5 = arith.constant 0 : index
    %c0_6 = arith.constant 0 : index
    %7 = vector.load %arg4[%c0_4, %c0_5, %c0_6] : memref<1x1x256xf32, #tpu.memory_space<vmem>>, vector<1x1x256xf32>
    %cst_7 = arith.constant dense<0.000000e+00> : vector<256xf32>
    %8 = vector.multi_reduction <add>, %6, %cst_7 [0] : vector<8x256xf32> to vector<256xf32>
    %9 = vector.shape_cast %8 : vector<256xf32> to vector<1x1x256xf32>
    %10 = arith.addf %7, %9 : vector<1x1x256xf32>
    %c0_8 = arith.constant 0 : index
    %c0_9 = arith.constant 0 : index
    %c0_10 = arith.constant 0 : index
    %11 = vector.load %arg4[%c0_8, %c0_9, %c0_10] : memref<1x1x256xf32, #tpu.memory_space<vmem>>, vector<1x1x256xf32>
    tpu.vector_store %arg4[%c0_8, %c0_9, %c0_10], %10 {strides = array<i32>} : memref<1x1x256xf32, #tpu.memory_space<vmem>>, vector<1x1x256xf32>,
    %c0_11 = arith.constant 0 : index
    %c0_12 = arith.constant 0 : index
    %c0_13 = arith.constant 0 : index
    %12 = vector.load %arg5[%c0_11, %c0_12, %c0_13] : memref<1x1x256xf32, #tpu.memory_space<vmem>>, vector<1x1x256xf32>
    %13 = arith.mulf %6, %6 : vector<8x256xf32>
    %cst_14 = arith.constant dense<0.000000e+00> : vector<256xf32>
    %14 = vector.multi_reduction <add>, %13, %cst_14 [0] : vector<8x256xf32> to vector<256xf32>
    %15 = vector.shape_cast %14 : vector<256xf32> to vector<1x1x256xf32>
    %16 = arith.addf %12, %15 : vector<1x1x256xf32>
    %c0_15 = arith.constant 0 : index
    %c0_16 = arith.constant 0 : index
    %c0_17 = arith.constant 0 : index
    %17 = vector.load %arg5[%c0_15, %c0_16, %c0_17] : memref<1x1x256xf32, #tpu.memory_space<vmem>>, vector<1x1x256xf32>
    tpu.vector_store %arg5[%c0_15, %c0_16, %c0_17], %16 {strides = array<i32>} : memref<1x1x256xf32, #tpu.memory_space<vmem>>, vector<1x1x256xf32>,
    return
  }
  func.func @transform_0(%arg0: i32, %arg1: i32) -> (i32, i32) {
    %c1_i32 = arith.constant 1 : i32
    %0 = arith.muli %arg0, %c1_i32 : i32
    %1 = arith.addi %0, %arg1 : i32
    %c0_i32 = arith.constant 0 : i32
    %c0_i32_0 = arith.constant 0 : i32
    return %1, %c0_i32 : i32, i32
  }
  func.func @transform_1(%arg0: i32, %arg1: i32) -> (i32, i32) {
    %c0_i32 = arith.constant 0 : i32
    %c0_i32_0 = arith.constant 0 : i32
    %c0_i32_1 = arith.constant 0 : i32
    return %c0_i32, %c0_i32_0 : i32, i32
  }
  func.func @transform_2(%arg0: i32, %arg1: i32) -> (i32, i32, i32) {
    %c0_i32 = arith.constant 0 : i32
    %c0_i32_0 = arith.constant 0 : i32
    %c0_i32_1 = arith.constant 0 : i32
    return %arg0, %c0_i32, %c0_i32_0 : i32, i32, i32
  }
  func.func @transform_3(%arg0: i32, %arg1: i32) -> (i32, i32, i32) {
    %c0_i32 = arith.constant 0 : i32
    %c0_i32_0 = arith.constant 0 : i32
    %c0_i32_1 = arith.constant 0 : i32
    return %arg0, %c0_i32, %c0_i32_0 : i32, i32, i32
  }
}

</mosaic_0001>

<bundles_post_ra>
// kernel: tpu_custom_call.1
= control target key start
LH: loop header
LB: loop body
LE: loop exit
PB: predicated region body
PF: predicated region fallthrough
CT: control target
= control target key end

     0   :  { %9 = vsyncpa [#allocation3], 0  ;;  %s1228_s0 = inlined_call_operand.hbm [shape: f32[16,128], index: 0, kind: input, shape index: {}]   ;;  %s1229_s1 = inlined_call_operand.hbm [shape: bf16[128,256], index: 1, kind: input, shape index: {}]   ;;  %s1230_s2 = inlined_call_operand.hbm [shape: f32[2,1,256], index: 2, kind: output, shape index: {0}]   ;;  %s1231_s3 = inlined_call_operand.hbm [shape: f32[2,1,256], index: 3, kind: output, shape index: {1}]  }
   0x1   :  { %11 = vsyncpa [#allocation3 + $0x1], 0 }
   0x2   :  { %12 = vsyncpa [#allocation6], 0 }
   0x3   :  { %13 = vsyncpa [#allocation4], 0 }
   0x4   :  { %15 = vsyncpa [#allocation4 + $0x1], 0 }
   0x5   :  { %16 = vsyncpa [#allocation9], 0 }
   0x6   :  { %18 = vsyncpa [#allocation9 + $0x1], 0  ;;  %s957_s12 = smov 0   ;;  %s959_s13 = smov 0  }
   0x7   :  { %s961_s14 = smov 0   ;;  %s963_s15 = smov 0  }
   0x8   :  { %s965_s16 = smov 0   ;;  %s967_s17 = smov 0  }
   0x9 LB: > { %s605_s18 = sadd.s32 4294967295, %s926_s17   ;;  %s606_s19 = sadd.s32 4294967294, %s926_s17   ;;  %s926_s17 = sphi %s967_s17, %s24_s17   ;;  %s922_s16 = sphi %s965_s16, %s1257_s16   ;;  %s918_s15 = sphi %s963_s15, %s1256_s15   ;;  %s914_s14 = sphi %s961_s14, %s1255_s14   ;;  %s910_s13 = sphi %s959_s13, %s1254_s13   ;;  %s906_s12 = sphi %s957_s12, %s1253_s12  }
   0xa   : > { %p58_p0 = scmp.ne.s32.totalorder %s910_s13, %s906_s12  ;;  %p991_p1 = scmp.eq.s32.totalorder %s605_s18, 0 }
   0xb   : > { %p995_p2 = scmp.eq.s32.totalorder %s605_s18, 1  ;;  %p109_p3 = scmp.eq.s32.totalorder %s606_s19, 1 }
   0xc   : > { %s1236_s20 = scalar_select %p991_p1, 1, 0 }
   0xd   : > { %s1237_s21 = scalar_select %p995_p2, 1, 0 }
   0xe   : > { %p1001_p4 = por %p991_p1, %p58_p0  ;;  %p607_p5 = scmp.ge.s32.totalorder %s926_s17, 1 }
   0xf   : > { %p1006_p6 = por %p109_p3, %p58_p0  ;;  %p142_p7 = scmp.lt.s32.totalorder %s926_s17, 3 }
  0x10   : > { %s1238_s22 = scalar_select %p1001_p4, 1, 0 }
  0x11   : > { %s1239_s23 = scalar_select %p1006_p6, 1, 0 }
  0x12   : > { %p1011_p8 = pnand %p607_p5, %p142_p7  ;;  %s928_s25 = smov [#allocation5]  }
  0x13   : > { %s154_s26 = sshll.u32 %s928_s25, 4  ;;  %s36_s28 = sadd.s32 1, %s922_s16  ;;  %s155_s26 = int_to_ptr.vmem [resolvable:$true] %s154_s26 }
  0x14   : > { %s1240_s24 = scalar_select %p1011_p8, 1, 0 }
  0x15   : > { %p653_p9 = pneg %p1011_p8  ;;  %s750_s4 = scalar_lea.hbm %s1229_s1, 2048 }
  0x16   : > { %p751_p12 = scmp.ne.s32.totalorder %s1229_s1, %s750_s4  ;;  %p757_p5 = scmp.lt.u32.totalorder %s750_s4, %s1229_s1 }
  0x17   : > { %p1020_p11 = pnand %p653_p9, %p991_p1 }
  0x19   : > { %p752_p13 = pneg %p1020_p11 }
  0x1b   : > { %p753_p0 = pnand %p752_p13, %p751_p12 }
  0x1d   : > { %p754_p3 = pneg %p753_p0 }
  0x1f   : > { %p759_p7 = pnand %p757_p5, %p754_p3 }
  0x21   : > { %762 = shalt.err (!%p759_p7)
}
  0x22   : > { %s763_s9 = scalar_lea.vmem %s155_s26, 2048  ;;  %p771_p1 = scmp.lt.s32.totalorder %s155_s26, %s155_s26 }
  0x23   : > { %p764_p9 = scmp.ne.s32.totalorder %s155_s26, %s763_s9  ;;  %p772_p4 = scmp.lt.s32.totalorder %s763_s9, %s763_s9 }
  0x25   : > { %p766_p10 = pnand %p764_p9, %p752_p13  ;;  %p773_p8 = por %p772_p4, %p771_p1 }
  0x27   : > { %p767_p6 = pneg %p766_p10 }
  0x29   : > { %p774_p2 = pnand %p773_p8, %p767_p6 }
  0x2b   : > { %777 = shalt.err (!%p774_p2)
}
  0x2c   : > { %s929_s10 = smov 128   ;;  %s930_s11 = smov 8  }
  0x2d   : > { %656 = dma.hbm_to_vmem [thread:$0]  (!%p1020_p11), %s1229_s1, 2048, %s155_s26, [#allocation6], %s929_s10, %s929_s10, %s930_s11  }
  0x2e   : > { %p38_p1 = scmp.ge.s32.totalorder %s36_s28, 2  ;;  %s45_s25 = sadd.s32 1, %s914_s14 }
  0x2f   : > { %p52_p2 = scmp.ne.s32.totalorder %s914_s14, %s910_s13  ;;  %p53_p4 = scmp.eq.s32.totalorder %s926_s17, 0 }
  0x30   : > { %s1259_s28 = smov (%p38_p1, %s36_s28), 0  ;;  %p1243_p8 = scmp.ne.s32.totalorder %s1237_s21, 0 }
  0x31   : > { %p1047_p6 = por %p53_p4, %p52_p2  ;;  %s42_s27 = ssub.s32 %s922_s16, %s1259_s28 }
  0x32   : > { %p1053_p10 = por %p1243_p8, %p52_p2  ;;  %p669_p12 = scmp.lt.s32.totalorder %s926_s17, 2 }
  0x33   : > { %p43_p11 = scmp.eq.s32.totalorder %s42_s27, 0  ;;  %s168_s26 = sand.u32 1, %s914_s14  }
  0x34   : > { %s610_s4 = sshll.u32 %s168_s26, 3  ;;  %s611_s6 = sshll.u32 %s922_s16, 7 }
  0x35   : > { %s1062_s5 = scalar_select %p43_p11, %s914_s14, %s45_s25  }
  0x36   : > { %s1068_s9 = scalar_lea.hbm %s1228_s0, %s611_s6  ;;  %s172_s21 = scalar_lea.vmem [#allocation2], %s610_s4 }
  0x37   : > { %s180_s10 = sshll.u32 %s172_s21, 4  ;;  %p1074_p13 = pnand %p669_p12, %p1047_p6  ;;  %s1070_s10 = int_to_ptr.vmem [resolvable:$true] %s180_s10 }
  0x38   : > { %s169_s18 = scalar_lea.sflag [#allocation3], %s168_s26  ;;  %s778_s19 = scalar_lea.hbm %s1068_s9, 128 }
  0x39   : > { %p779_p0 = scmp.ne.s32.totalorder %s1068_s9, %s778_s19  ;;  %p780_p3 = pneg %p1074_p13 }
  0x3a   : > { %s783_s4 = scalar_lea.hbm %s1228_s0, 256  ;;  %p784_p9 = scmp.lt.u32.totalorder %s1068_s9, %s1228_s0 }
  0x3b   : > { %p781_p5 = pnand %p780_p3, %p779_p0  ;;  %p785_p1 = scmp.lt.u32.totalorder %s783_s4, %s778_s19 }
  0x3c   : > { %p787_p4 = scmp.lt.u32.totalorder %s778_s19, %s1068_s9 }
  0x3d   : > { %p782_p7 = pneg %p781_p5  ;;  %p786_p2 = por %p785_p1, %p784_p9 }
  0x3f   : > { %p788_p6 = por %p787_p4, %p786_p2 }
  0x41   : > { %p789_p8 = pnand %p788_p6, %p782_p7 }
  0x43   : > { %792 = shalt.err (!%p789_p8)
}
  0x44   : > { %s793_s26 = scalar_lea.vmem %s1070_s10, 128  ;;  %s931_s7 = smov [#allocation2]  }
  0x45   : > { %p794_p12 = scmp.ne.s32.totalorder %s1070_s10, %s793_s26  ;;  %s798_s8 = sshll.u32 %s931_s7, 4  ;;  %s799_s8 = int_to_ptr.vmem [resolvable:$false] %s798_s8 }
  0x46   : > { %s800_s21 = scalar_lea.vmem %s799_s8, 256  ;;  %p801_p5 = scmp.lt.s32.totalorder %s1070_s10, %s799_s8 }
  0x47   : > { %p796_p11 = pnand %p794_p12, %p780_p3  ;;  %p802_p9 = scmp.lt.s32.totalorder %s800_s21, %s793_s26 }
  0x49   : > { %p797_p0 = pneg %p796_p11  ;;  %p803_p1 = por %p802_p9, %p801_p5 }
  0x4b   : > { %p804_p2 = pnand %p803_p1, %p797_p0 }
  0x4d   : > { %807 = shalt.err (!%p804_p2)
}
  0x4e   : > { %660 = dma.hbm_to_vmem [thread:$0]  (!%p1074_p13), %s1068_s9, 128, %s1070_s10, %s169_s18  }
  0x4f   : > { %p1246_p7 = scmp.ne.s32.totalorder %s1240_s24, 0 }
  0x50   : > { %s1106_s19 = sand.u32 (!%p1246_p7), 1, %s910_s13   ;;  %p1247_p3 = scmp.ne.s32.totalorder (!%p1246_p7), %s1238_s22, 0 }
  0x51   : > { %189 = sbr.rel (%p1246_p7) target bundleno = 395 (0x18b), region = 28  ;;  %s613_s25 = sshll.u32 (!%p1246_p7), %s1106_s19, 3 }
  0x52   : > { %s192_s27 = scalar_lea.sflag (!%p1246_p7), [#allocation3], %s1106_s19  ;;  %s1110_s4 = scalar_lea.vmem (!%p1246_p7), [#allocation2], %s613_s25 }
  0x58   : > { %889 = dma.done.wait (%p1247_p3), %s192_s27, 128  }
  0x59   : > { %891 = vsyncadd (%p1247_p3), %s192_s27, 4294967168  ;;  %p1248_p13 = scmp.ne.s32.totalorder %s1236_s20, 0 }
  0x5b   : > { %893 = dma.done.wait (%p1248_p13), [#allocation6], 2048  }
  0x5c   : > { %895 = vsyncadd (%p1248_p13), [#allocation6], 4294965248  ;;  %v932_v0 = vmov 0   ;;  %v726_v1 = vld [vmem:[#allocation5 + $0x4] ss:$8 sps:$4 sm:$0xff]   ;;  %v239_v17 = vld [vmem:[%s1110_s4] sm:$0xff]  ;;  %v233_v19 = vlaneseq }
  0x5d   : > { %369 = vmatprep.mubr.bf16.mxu0 %v932_v0  ;;  %v728_v2 = vld [vmem:[#allocation5] ss:$8 sps:$4 sm:$0xff]   ;;  %337 = vmatprep.subr.bf16.mxu0 %v726_v1  ;;  %v729_v3 = vld [vmem:[#allocation5 + $0x14] ss:$8 sps:$4 sm:$0xff]   ;;  %v731_v4 = vld [vmem:[#allocation5 + $0x10] ss:$8 sps:$4 sm:$0xff]   ;;  %v240_v18 = vpack.c.bf16 %v239_v17, %v239_v17 }
  0x5e   : > { %338 = vmatpush1.bf16.msra.mxu0 %v728_v2  ;;  %v732_v5 = vld [vmem:[#allocation5 + $0x24] ss:$8 sps:$4 sm:$0xff]   ;;  %v734_v6 = vld [vmem:[#allocation5 + $0x20] ss:$8 sps:$4 sm:$0xff]   ;;  %v735_v7 = vld [vmem:[#allocation5 + $0x34] ss:$8 sps:$4 sm:$0xff]  }
  0x5f   : > { %339 = vmatprep.subr.bf16.mxu0 %v729_v3  ;;  %v737_v8 = vld [vmem:[#allocation5 + $0x30] ss:$8 sps:$4 sm:$0xff]   ;;  %v738_v9 = vld [vmem:[#allocation5 + $0x44] ss:$8 sps:$4 sm:$0xff]   ;;  %v740_v10 = vld [vmem:[#allocation5 + $0x40] ss:$8 sps:$4 sm:$0xff]  }
  0x60   : > { %v741_v11 = vld [vmem:[#allocation5 + $0x54] ss:$8 sps:$4 sm:$0xff]   ;;  %v743_v12 = vld [vmem:[#allocation5 + $0x50] ss:$8 sps:$4 sm:$0xff]   ;;  %v744_v13 = vld [vmem:[#allocation5 + $0x64] ss:$8 sps:$4 sm:$0xff]  }
  0x61   : > { %v746_v14 = vld [vmem:[#allocation5 + $0x60] ss:$8 sps:$4 sm:$0xff]   ;;  %v747_v15 = vld [vmem:[#allocation5 + $0x74] ss:$8 sps:$4 sm:$0xff]   ;;  %v749_v16 = vld [vmem:[#allocation5 + $0x70] ss:$8 sps:$4 sm:$0xff]  }
  0x62   : > { %340 = vmatpush1.bf16.msra.mxu0 %v731_v4  ;;  %s615_s20 = sshll.u32 %s1106_s19, 1  ;;  %vm1122_vm0 = vcmp.lt.s32.totalorder %v233_v19, 256  ;;  %v933_v21 = vmov 0.0   ;;  %v934_v33 = vmov 1966171168   ;;  %v398_v44 = vshrl.u32 %v233_v19, 7 }
  0x63   : > { %341 = vmatprep.subr.bf16.mxu0 %v732_v5  ;;  %s1126_s22 = scalar_lea.vmem [#allocation7], %s615_s20  ;;  %s1131_s24 = scalar_lea.vmem [#allocation8], %s615_s20  ;;  %v395_v34 = vunpack.c.l.s4 %v934_v33 }
  0x64   : > { %237 = vst.msk [vmem:[%s1126_s22] sm:$0x3] %vm1122_vm0, %v933_v21  ;;  %238 = vst.msk [vmem:[%s1131_s24] sm:$0x3] %vm1122_vm0, %v933_v21  ;;  %s641_s9 = sshll.u32 %s918_s15, 5  ;;  %s470_s10 = sshll.u32 %s1126_s22, 4  ;;  %s1146_s10 = int_to_ptr.vmem [resolvable:$true] %s470_s10 }
  0x65   : > { %v396_v43 = vunpack.c.0.s8 %v395_v34  ;;  %s484_s11 = sshll.u32 %s1131_s24, 4  ;;  %s1144_s6 = scalar_lea.hbm %s1230_s2, %s641_s9  ;;  %s1156_s11 = int_to_ptr.vmem [resolvable:$true] %s484_s11 }
  0x66   : > { %342 = vmatpush1.bf16.msra.mxu0 %v734_v6  ;;  %s1154_s7 = scalar_lea.hbm %s1231_s3, %s641_s9  ;;  %s451_s8 = scalar_lea.sflag [#allocation4], %s1106_s19 }
  0x67   : > { %343 = vmatprep.subr.bf16.mxu0 %v735_v7  ;;  %v399_v53 = vsub.s32 %v396_v43, %v398_v44  ;;  %s808_s21 = scalar_lea.vmem %s1146_s10, 32  ;;  %s935_s25 = smov [#allocation7]  }
  0x68   : > { %p809_p4 = scmp.ne.s32.totalorder %s1146_s10, %s808_s21  ;;  %s812_s27 = sshll.u32 %s935_s25, 4  ;;  %s813_s27 = int_to_ptr.vmem [resolvable:$false] %s812_s27 }
  0x69   : > { %s814_s4 = scalar_lea.vmem %s813_s27, 64  ;;  %p815_p12 = scmp.lt.s32.totalorder %s1146_s10, %s813_s27 }
  0x6a   : > { %344 = vmatpush1.bf16.msra.mxu0 %v737_v8  ;;  %p810_p6 = pnand %p809_p4, %p1053_p10  ;;  %p816_p11 = scmp.lt.s32.totalorder %s814_s4, %s808_s21 }
  0x6b   : > { %345 = vmatprep.subr.bf16.mxu0 %v738_v9  ;;  %v378_v60 = vld [vmem:[%s1126_s22] sm:$0x3]  ;;  %v415_v63 = vld [vmem:[%s1131_s24] sm:$0x3] }
  0x6c   : > { %p811_p8 = pneg %p810_p6  ;;  %p817_p0 = por %p816_p11, %p815_p12 }
  0x6e   : > { %346 = vmatpush1.bf16.msra.mxu0 %v740_v10  ;;  %p818_p5 = pnand %p817_p0, %p811_p8 }
  0x6f   : > { %347 = vmatprep.subr.bf16.mxu0 %v741_v11 }
  0x72   : > { %348 = vmatpush1.bf16.msra.mxu0 %v743_v12 }
  0x73   : > { %349 = vmatprep.subr.bf16.mxu0 %v744_v13 }
  0x76   : > { %350 = vmatpush1.bf16.msra.mxu0 %v746_v14 }
  0x77   : > { %351 = vmatprep.subr.bf16.mxu0 %v747_v15 }
  0x7a   : > { %352 = vmatpush1.bf16.msra.mxu0 %v749_v16 }
  0x7d   : > { %370 = vmatmul.mubr.bf16.vlgmr.msra.gmra.mrb[0].mxu0 %v240_v18 }
 0x150   : > { %v371_v22 = vpop.f32.mrb[0].mxu0 }
 0x151   : > { %v379_v23 = vrot.slane %v371_v22, 4  ;;  %v416_v24 = vmul.f32 %v371_v22, %v371_v22  ;;  %v373_v25 = vpop.f32.mrb[1].mxu0 }
 0x152   : > { %v385_v26 = vrot.slane %v373_v25, 4  ;;  %v417_v27 = vmul.f32 %v373_v25, %v373_v25  ;;  %v375_v28 = vpop.f32.mrb[2].mxu0 }
 0x153   : > { %v380_v29 = vadd.f32 %v379_v23, %v371_v22  ;;  %v418_v30 = vrot.slane %v416_v24, 4  ;;  %v376_v31 = vpop.f32.mrb[3].mxu0 }
 0x154   : > { %v386_v32 = vadd.f32 %v385_v26, %v373_v25  ;;  %v424_v35 = vrot.slane %v417_v27, 4 }
 0x155   : > { %v381_v36 = vrot.slane %v380_v29, 2  ;;  %v419_v37 = vadd.f32 %v418_v30, %v416_v24 }
 0x156   : > { %v387_v38 = vrot.slane %v386_v32, 2  ;;  %v425_v39 = vadd.f32 %v424_v35, %v417_v27 }
 0x157   : > { %v382_v40 = vadd.f32 %v381_v36, %v380_v29  ;;  %v420_v41 = vrot.slane %v419_v37, 2 }
 0x158   : > { %v388_v42 = vadd.f32 %v387_v38, %v386_v32  ;;  %v426_v45 = vrot.slane %v425_v39, 2 }
 0x159   : > { %v383_v46 = vrot.slane %v382_v40, 1  ;;  %v421_v47 = vadd.f32 %v420_v41, %v419_v37 }
 0x15a   : > { %v389_v48 = vrot.slane %v388_v42, 1  ;;  %v427_v49 = vadd.f32 %v426_v45, %v425_v39 }
 0x15b   : > { %v384_v50 = vadd.f32 %v383_v46, %v382_v40  ;;  %v422_v51 = vrot.slane %v421_v47, 1 }
 0x15c   : > { %v390_v52 = vadd.f32 %v389_v48, %v388_v42  ;;  %v428_v54 = vrot.slane %v427_v49, 1 }
 0x15d   : > { %v423_v55 = vadd.f32 %v422_v51, %v421_v47 }
 0x15e   : > { %v393_v56 = vcombine.low %v384_v50, %v390_v52  ;;  %v429_v57 = vadd.f32 %v428_v54, %v427_v49 }
 0x160   : > { %v400_v58 = vrot.slane %v393_v56, %v399_v53  ;;  %v432_v59 = vcombine.low %v423_v55, %v429_v57 }
 0x162   : > { %v407_v61 = vrot.slane %v400_v58, %v399_v53  ;;  %v439_v62 = vrot.slane %v432_v59, %v399_v53 }
 0x164   : > { %v446_v0 = vrot.slane %v439_v62, %v399_v53  ;;  %v409_v1 = vadd.f32 %v407_v61, %v378_v60 }
 0x166   : > { %414 = vst.msk [vmem:[%s1126_s22] sm:$0x3] %vm1122_vm0, %v409_v1  ;;  %v448_v2 = vadd.f32 %v446_v0, %v415_v63 }
 0x167   : > { %821 = shalt.err (!%p818_p5)
}
 0x168   : > { %s822_s20 = scalar_lea.hbm %s1144_s6, 32  ;;  %s826_s18 = scalar_lea.hbm %s1230_s2, 64 }
 0x169   : > { %p823_p9 = scmp.ne.s32.totalorder %s1144_s6, %s822_s20  ;;  %p827_p7 = scmp.lt.u32.totalorder %s1144_s6, %s1230_s2 }
 0x16a   : > { %p828_p3 = scmp.lt.u32.totalorder %s826_s18, %s822_s20  ;;  %p830_p4 = scmp.lt.u32.totalorder %s822_s20, %s1144_s6 }
 0x16b   : > { %p824_p1 = pnand %p823_p9, %p1053_p10 }
 0x16c   : > { %p829_p13 = por %p828_p3, %p827_p7 }
 0x16d   : > { %p825_p2 = pneg %p824_p1 }
 0x16e   : > { %p831_p6 = por %p830_p4, %p829_p13 }
 0x170   : > { %p832_p8 = pnand %p831_p6, %p825_p2 }
 0x172   : > { %835 = shalt.err (!%p832_p8)
}
 0x173   : > { %649 = dma.vmem_to_hbm [thread:$0]  (%p1053_p10), %s1146_s10, 32, %s1144_s6, %s451_s8   ;;  %449 = vst.msk [vmem:[%s1131_s24] sm:$0x3] %vm1122_vm0, %v448_v2 }
 0x174   : > { %s456_s26 = scalar_lea.sflag [#allocation9], %s1106_s19  ;;  %s836_s21 = scalar_lea.vmem %s1156_s11, 32 }
 0x175   : > { %p837_p12 = scmp.ne.s32.totalorder %s1156_s11, %s836_s21  ;;  %s936_s25 = smov [#allocation8]  }
 0x176   : > { %s840_s27 = sshll.u32 %s936_s25, 4  ;;  %s841_s27 = int_to_ptr.vmem [resolvable:$false] %s840_s27 }
 0x177   : > { %p838_p11 = pnand %p837_p12, %p1053_p10  ;;  %s842_s4 = scalar_lea.vmem %s841_s27, 64 }
 0x178   : > { %p843_p5 = scmp.lt.s32.totalorder %s1156_s11, %s841_s27  ;;  %p844_p9 = scmp.lt.s32.totalorder %s842_s4, %s836_s21 }
 0x179   : > { %p839_p0 = pneg %p838_p11 }
 0x17a   : > { %p845_p1 = por %p844_p9, %p843_p5 }
 0x17c   : > { %p846_p2 = pnand %p845_p1, %p839_p0 }
 0x17e   : > { %849 = shalt.err (!%p846_p2)
}
 0x17f   : > { %s850_s19 = scalar_lea.hbm %s1154_s7, 32  ;;  %s854_s6 = scalar_lea.hbm %s1231_s3, 64 }
 0x180   : > { %p851_p7 = scmp.ne.s32.totalorder %s1154_s7, %s850_s19  ;;  %p855_p4 = scmp.lt.u32.totalorder %s1154_s7, %s1231_s3 }
 0x181   : > { %p856_p6 = scmp.lt.u32.totalorder %s854_s6, %s850_s19  ;;  %p858_p12 = scmp.lt.u32.totalorder %s850_s19, %s1154_s7 }
 0x182   : > { %p852_p3 = pnand %p851_p7, %p1053_p10 }
 0x183   : > { %p857_p8 = por %p856_p6, %p855_p4 }
 0x184   : > { %p853_p13 = pneg %p852_p3 }
 0x185   : > { %p859_p11 = por %p858_p12, %p857_p8 }
 0x187   : > { %p860_p0 = pnand %p859_p11, %p853_p13 }
 0x189   : > { %863 = shalt.err (!%p860_p0)
}
 0x18a   : > { %650 = dma.vmem_to_hbm [thread:$0]  (%p1053_p10), %s1156_s11, 32, %s1154_s7, %s456_s26  }
 0x18b PF: > { %s496_s22 = sand.u32 1, %s906_s12   ;;  %p1251_p5 = scmp.ne.s32.totalorder %s1239_s23, 0 }
 0x18c   : > { %p1252_p9 = scmp.ge.s32.totalorder %s926_s17, 2  ;;  %s497_s9 = scalar_lea.sflag [#allocation4], %s496_s22 }
 0x18e   : > { %p662_p1 = pnand %p1252_p9, %p1251_p5 }
 0x190   : > { %897 = dma.done.wait (!%p662_p1), %s497_s9, 32  }
 0x191   : > { %899 = vsyncadd (!%p662_p1), %s497_s9, 4294967264  ;;  %s506_s18 = scalar_lea.sflag [#allocation9], %s496_s22 }
 0x192   : > { %901 = dma.done.wait (!%p662_p1), %s506_s18, 32  }
 0x193   : > { %903 = vsyncadd (!%p662_p1), %s506_s18, 4294967264  ;;  %s24_s17 = sadd.s32 1, %s926_s17   ;;  %s1253_s12 = smov %s910_s13 }
 0x194   : > { %p21_p2 = scmp.ge.s32.totalorder %s24_s17, 4   ;;  %s1254_s13 = smov %s914_s14 }
 0x195   : > { %s1255_s14 = smov %s1062_s5  ;;  %s1256_s15 = smov %s922_s16 }
 0x196   : > { %s1257_s16 = smov %s1259_s28  ;;  %23 = sbr.rel (!%p21_p2) target bundleno = 9 (0x9), region = 98 }
 0x19d   :  { %511 = vsyncpa [#allocation3], 1 }
 0x19e   :  { %513 = vsyncpa [#allocation3 + $0x1], 1 }
 0x19f   :  { %514 = vsyncpa [#allocation6], 1 }
 0x1a0   :  { %515 = vsyncpa [#allocation4], 1 }
 0x1a1   :  { %517 = vsyncpa [#allocation4 + $0x1], 1 }
 0x1a2   :  { %518 = vsyncpa [#allocation9], 1 }
 0x1a3   :  { %520 = vsyncpa [#allocation9 + $0x1], 1 }

</bundles_post_ra>
